<compile_context>
chip_gen: v7x
topology: tpu7x:2x2x1
jax: 0.10.0
libtpu: 0.0.40
codegen_flags: <defaults>
</compile_context>

<pallas_src>
import functools

import jax
import jax.numpy as jnp
from jax import lax
from jax.experimental import pallas as pl
from jax.experimental.pallas import tpu as pltpu


def _round_up(x, m):
    return (x + m - 1) // m * m


def _avg_embed_kernel(idx_ref, len_ref, table_ref, out_ref, acc_ref, *,
                      seq_len, v_block, s_chunk):
    """One (batch_tile, vocab_tile) grid step.

    idx_ref:   VMEM (bb, S)        int32    token ids for this batch tile
    len_ref:   VMEM (bb, 1)        float32  sequence lengths
    table_ref: VMEM (v_block, D)            embedding rows for this vocab tile
    out_ref:   VMEM (bb, D)        float32  averaged embeddings (written on last v)
    acc_ref:   VMEM (bb, D)        float32  running sum across vocab tiles
    """
    v = pl.program_id(1)

    @pl.when(v == 0)
    def _init():
        acc_ref[...] = jnp.zeros_like(acc_ref)

    idx = idx_ref[...]                                     # (bb, S)
    table = table_ref[...]                                 # (v_block, D)
    bb = idx.shape[0]

    # Counts operand dtype for the MXU: bf16 is exact for counts <= 256 and
    # avoids the multi-pass f32 MXU decomposition when the table is bf16.
    count_dtype = (jnp.bfloat16
                   if table.dtype == jnp.bfloat16 and seq_len <= 256
                   else jnp.float32)

    # Vocabulary ids covered by this table tile.
    v_base = v * v_block
    vocab_ids = v_base + lax.broadcasted_iota(jnp.int32, (1, 1, v_block), 2)

    # Token-count matrix (bb, v_block): VPU compare + reduce over small static
    # sequence chunks (bounds the (bb, s_chunk, v_block) temporary).
    # Out-of-range / padded-V ids simply contribute zero (no OOB reads).
    counts = jnp.zeros((bb, v_block), count_dtype)
    for s0 in range(0, seq_len, s_chunk):
        blk = idx[:, s0:min(s0 + s_chunk, seq_len)]        # static slice
        hit = (blk[:, :, None] == vocab_ids).astype(count_dtype)
        counts = counts + jnp.sum(hit, axis=1)

    # Whole-tile embedding sum as a single MXU matmul, f32 accumulation.
    acc_ref[...] += jnp.dot(counts, table.astype(count_dtype),
                            preferred_element_type=jnp.float32)

    @pl.when(v == pl.num_programs(1) - 1)
    def _finalize():
        # One reciprocal-multiply per tile (exact; approx=True would move it
        # to the EUP slot but loosens the 1e-5 tolerance).
        inv_len = pl.reciprocal(len_ref[...])              # (bb, 1) f32
        out_ref[...] = (acc_ref[...] * inv_len).astype(out_ref.dtype)


def baseline_encoder(indices, lengths, word_embeddings, *, batch_block=None):
    """indices: (B, S) int; lengths: (B,) int; word_embeddings: (V, D).
    Returns (B, D) float32 averaged embeddings (matches torch promotion)."""
    B, S = indices.shape
    V, D = word_embeddings.shape
    itemsize = jnp.dtype(word_embeddings.dtype).itemsize

    # ---- generation-aware sizing -------------------------------------------
    try:
        vmem_cap = int(pltpu.get_tpu_info().vmem_capacity_bytes)
    except Exception:
        vmem_cap = 64 << 20                                # v7x-safe fallback
    if batch_block is None:
        try:
            kind = jax.devices()[0].device_kind.lower()
        except Exception:
            kind = ""
        batch_block = 128 if "v5" in kind else 256         # match MXU height

    bb = min(batch_block, _round_up(B, 8))
    B_pad = _round_up(B, bb)

    s_chunk = min(8, S)
    # Vocab tile bounded by (a) the in-kernel (bb, s_chunk, v_block) temp and
    # (b) a double-buffered table tile within ~35% of VMEM.
    temp_cap = (4 << 20) // (bb * s_chunk * 4)
    table_cap = int(0.35 * vmem_cap) // max(1, 2 * D * itemsize)
    v_cap = max(8, (min(temp_cap, table_cap) // 8) * 8)
    if V <= v_cap:
        v_block, V_pad = V, V                              # resident: fetched once
    else:
        v_block = v_cap                                    # stream table tiles
        V_pad = _round_up(V, v_block)

    # ---- host-side casts / padding -----------------------------------------
    idx = indices.astype(jnp.int32)
    len_col = lengths.astype(jnp.float32).reshape(-1, 1)
    if B_pad != B:
        idx = jnp.pad(idx, ((0, B_pad - B), (0, 0)))
        len_col = jnp.pad(len_col, ((0, B_pad - B), (0, 0)), constant_values=1.0)
    table = word_embeddings
    if V_pad != V:
        table = jnp.pad(table, ((0, V_pad - V), (0, 0)))

    grid = (B_pad // bb, V_pad // v_block)

    kernel = functools.partial(_avg_embed_kernel, seq_len=S,
                               v_block=v_block, s_chunk=s_chunk)

    vmem_need = (2 * v_block * D * itemsize                # table (double-buffered)
                 + 2 * bb * S * 4                          # index tiles
                 + 2 * bb * 4                              # length tiles
                 + 2 * bb * D * 4                          # output tiles
                 + bb * D * 4                              # accumulator scratch
                 + bb * s_chunk * v_block * 4              # one-hot temp
                 + bb * v_block * 4                        # counts
                 + (4 << 20))                              # headroom
    vmem_limit = int(min(max(vmem_need, 32 << 20), int(0.9 * vmem_cap)))

    grid_spec = pltpu.PrefetchScalarGridSpec(
        num_scalar_prefetch=0,
        grid=grid,
        in_specs=[
            pl.BlockSpec((bb, S), lambda t, v: (t, 0)),        # indices
            pl.BlockSpec((bb, 1), lambda t, v: (t, 0)),        # lengths
            pl.BlockSpec((v_block, D), lambda t, v: (v, 0)),   # table tile
        ],
        out_specs=pl.BlockSpec((bb, D), lambda t, v: (t, 0)),
        scratch_shapes=[pltpu.VMEM((bb, D), jnp.float32)],
    )

    out = pl.pallas_call(
        kernel,
        out_shape=jax.ShapeDtypeStruct((B_pad, D), jnp.float32),
        grid_spec=grid_spec,
        compiler_params=pltpu.CompilerParams(
            dimension_semantics=("parallel", "arbitrary"),
            vmem_limit_bytes=vmem_limit,
        ),
    )(idx, len_col, table)

    return out[:B]
    # TODO(synk): optionally pipeline_mode=pl.Buffered(1) on the resident table
    # BlockSpec to halve its footprint on v7x's 64 MiB VMEM.


def baseline_encoder_ref(indices, lengths, word_embeddings):
    emb = word_embeddings[indices]                         # (B, S, D)
    summed = jnp.sum(emb, axis=1)                          # (B, D)
    return summed / lengths.astype(jnp.float32)[:, None]


if __name__ == "__main__":
    key = jax.random.PRNGKey(0)
    k_emb, k_idx, k_len = jax.random.split(key, 3)

    B, S = 2, 8
    V, D = 32, 128

    word_embeddings = jax.random.normal(k_emb, (V, D), dtype=jnp.float32)
    indices = jax.random.randint(k_idx, (B, S), 0, V, dtype=jnp.int32)
    lengths = jax.random.randint(k_len, (B,), 1, S + 1, dtype=jnp.int32)

    out = baseline_encoder(indices, lengths, word_embeddings)
    out = jax.block_until_ready(out)

    ref = baseline_encoder_ref(indices, lengths, word_embeddings)
    assert out.shape == (B, D)
    assert jnp.allclose(out, ref, atol=1e-5, rtol=1e-5), "mismatch vs reference"

    print("KERNEL_OK")
</pallas_src>

<mosaic_0001>
module attributes {stable_mosaic.version = 11 : i64} {
  func.func @_avg_embed_kernel(%arg0: i32, %arg1: i32, %arg2: memref<8x8xi32, #tpu.memory_space<vmem>>, %arg3: memref<8x1xf32, #tpu.memory_space<vmem>>, %arg4: memref<32x128xf32, #tpu.memory_space<vmem>>, %arg5: memref<8x128xf32, #tpu.memory_space<vmem>>, %arg6: memref<8x128xf32, #tpu.memory_space<vmem>>) attributes {dimension_semantics = [#tpu.dimension_semantics<parallel>, #tpu.dimension_semantics<arbitrary>], iteration_bounds = array<i64: 1, 1>, scalar_prefetch = 0 : i64, scratch_operands = 1 : i64, tpu.core_type = #tpu.core_type<tc>, window_params = [{transform_indices = @transform_0, window_bounds = array<i64: 8, 8>}, {transform_indices = @transform_1, window_bounds = array<i64: 8, 1>}, {transform_indices = @transform_2, window_bounds = array<i64: 32, 128>}, {transform_indices = @transform_3, window_bounds = array<i64: 8, 128>}]} {
    %c0_i32 = arith.constant 0 : i32
    %0 = arith.cmpi eq, %arg1, %c0_i32 : i32
    %1 = arith.extui %0 : i1 to i32
    %c0_i32_0 = arith.constant 0 : i32
    %2 = arith.cmpi ne, %1, %c0_i32_0 : i32
    scf.if %2 {
      %cst_12 = arith.constant 0.000000e+00 : f32
      %25 = vector.broadcast %cst_12 : f32 to vector<8x128xf32>
      %c0_13 = arith.constant 0 : index
      %c0_14 = arith.constant 0 : index
      %26 = vector.load %arg6[%c0_13, %c0_14] : memref<8x128xf32, #tpu.memory_space<vmem>>, vector<8x128xf32>
      tpu.vector_store %arg6[%c0_13, %c0_14], %25 {strides = array<i32>} : memref<8x128xf32, #tpu.memory_space<vmem>>, vector<8x128xf32>,
    } else {
    }
    %c0 = arith.constant 0 : index
    %c0_1 = arith.constant 0 : index
    %3 = vector.load %arg2[%c0, %c0_1] : memref<8x8xi32, #tpu.memory_space<vmem>>, vector<8x8xi32>
    %c0_2 = arith.constant 0 : index
    %c0_3 = arith.constant 0 : index
    %4 = vector.load %arg4[%c0_2, %c0_3] : memref<32x128xf32, #tpu.memory_space<vmem>>, vector<32x128xf32>
    %c32_i32 = arith.constant 32 : i32
    %5 = arith.muli %arg1, %c32_i32 : i32
    %6 = tpu.iota {dimensions = array<i32: 2>} : vector<1x1x32xi32>
    %7 = vector.broadcast %5 : i32 to vector<1x1x32xi32>
    %8 = arith.addi %7, %6 : vector<1x1x32xi32>
    %cst = arith.constant 0.000000e+00 : f32
    %9 = vector.broadcast %cst : f32 to vector<8x32xf32>
    %10 = vector.shape_cast %3 : vector<8x8xi32> to vector<8x8x1xi32>
    %11 = vector.broadcast %10 : vector<8x8x1xi32> to vector<8x8x32xi32>
    %12 = vector.broadcast %8 : vector<1x1x32xi32> to vector<8x8x32xi32>
    %13 = arith.cmpi eq, %11, %12 : vector<8x8x32xi32>
    %14 = arith.extui %13 : vector<8x8x32xi1> to vector<8x8x32xi32>
    %15 = arith.sitofp %14 : vector<8x8x32xi32> to vector<8x8x32xf32>
    %cst_4 = arith.constant dense<0.000000e+00> : vector<8x32xf32>
    %16 = vector.multi_reduction <add>, %15, %cst_4 [1] : vector<8x8x32xf32> to vector<8x32xf32>
    %17 = arith.addf %9, %16 : vector<8x32xf32>
    %c0_5 = arith.constant 0 : index
    %c0_6 = arith.constant 0 : index
    %18 = vector.load %arg6[%c0_5, %c0_6] : memref<8x128xf32, #tpu.memory_space<vmem>>, vector<8x128xf32>
    %cst_7 = arith.constant dense<0.000000e+00> : vector<8x128xf32>
    %19 = tpu.matmul %17, %4, %cst_7 {dimension_numbers = #tpu.dot_dimension_numbers<[1], [0], [0], [1], [0, 0, 1, 1], [], []>} : vector<8x32xf32>, vector<32x128xf32>, vector<8x128xf32> -> vector<8x128xf32>
    %20 = arith.addf %18, %19 : vector<8x128xf32>
    %c0_8 = arith.constant 0 : index
    %c0_9 = arith.constant 0 : index
    %21 = vector.load %arg6[%c0_8, %c0_9] : memref<8x128xf32, #tpu.memory_space<vmem>>, vector<8x128xf32>
    tpu.vector_store %arg6[%c0_8, %c0_9], %20 {strides = array<i32>} : memref<8x128xf32, #tpu.memory_space<vmem>>, vector<8x128xf32>,
    %c0_i32_10 = arith.constant 0 : i32
    %22 = arith.cmpi eq, %arg1, %c0_i32_10 : i32
    %23 = arith.extui %22 : i1 to i32
    %c0_i32_11 = arith.constant 0 : i32
    %24 = arith.cmpi ne, %23, %c0_i32_11 : i32
    scf.if %24 {
      %c0_12 = arith.constant 0 : index
      %c0_13 = arith.constant 0 : index
      %25 = vector.load %arg3[%c0_12, %c0_13] : memref<8x1xf32, #tpu.memory_space<vmem>>, vector<8x1xf32>
      %26 = tpu.reciprocal %25 : vector<8x1xf32> -> vector<8x1xf32>
      %c0_14 = arith.constant 0 : index
      %c0_15 = arith.constant 0 : index
      %27 = vector.load %arg6[%c0_14, %c0_15] : memref<8x128xf32, #tpu.memory_space<vmem>>, vector<8x128xf32>
      %28 = vector.broadcast %26 : vector<8x1xf32> to vector<8x128xf32>
      %29 = arith.mulf %27, %28 : vector<8x128xf32>
      %c0_16 = arith.constant 0 : index
      %c0_17 = arith.constant 0 : index
      %30 = vector.load %arg5[%c0_16, %c0_17] : memref<8x128xf32, #tpu.memory_space<vmem>>, vector<8x128xf32>
      tpu.vector_store %arg5[%c0_16, %c0_17], %29 {strides = array<i32>} : memref<8x128xf32, #tpu.memory_space<vmem>>, vector<8x128xf32>,
    } else {
    }
    return
  }
  func.func @transform_0(%arg0: i32, %arg1: i32) -> (i32, i32) {
    %c0_i32 = arith.constant 0 : i32
    %c0_i32_0 = arith.constant 0 : i32
    return %arg0, %c0_i32 : i32, i32
  }
  func.func @transform_1(%arg0: i32, %arg1: i32) -> (i32, i32) {
    %c0_i32 = arith.constant 0 : i32
    %c0_i32_0 = arith.constant 0 : i32
    return %arg0, %c0_i32 : i32, i32
  }
  func.func @transform_2(%arg0: i32, %arg1: i32) -> (i32, i32) {
    %c0_i32 = arith.constant 0 : i32
    %c0_i32_0 = arith.constant 0 : i32
    return %arg1, %c0_i32 : i32, i32
  }
  func.func @transform_3(%arg0: i32, %arg1: i32) -> (i32, i32) {
    %c0_i32 = arith.constant 0 : i32
    %c0_i32_0 = arith.constant 0 : i32
    return %arg0, %c0_i32 : i32, i32
  }
}

</mosaic_0001>

<bundles_post_ra>
// kernel: tpu_custom_call.1
= control target key start
LH: loop header
LB: loop body
LE: loop exit
PB: predicated region body
PF: predicated region fallthrough
CT: control target
= control target key end

     0   :  { %8 = vsyncpa [#allocation4], 0  ;;  %s473_s0 = inlined_call_operand.vmem [shape: s32[8,8], index: 0, kind: input, shape index: {}]   ;;  %s474_s1 = inlined_call_operand.vmem [shape: f32[8,1], index: 1, kind: input, shape index: {}]   ;;  %s475_s2 = inlined_call_operand.hbm [shape: f32[32,128], index: 2, kind: input, shape index: {}]   ;;  %s476_s3 = inlined_call_operand.hbm [shape: f32[8,128], index: 3, kind: output, shape index: {}]  }
   0x1   :  { %9 = vsyncpa [#allocation5], 0  ;;  %s404_s12 = smov [#allocation3]   ;;  %s356_s16 = scalar_lea.hbm %s475_s2, 512 }
   0x2   :  { %s19_s13 = sshll.u32 %s404_s12, 4  ;;  %p357_p0 = scmp.ne.s32.totalorder %s475_s2, %s356_s16  ;;  %s20_s13 = int_to_ptr.vmem [resolvable:$true] %s19_s13 }
   0x3   :  { %p360_p1 = scmp.lt.u32.totalorder %s356_s16, %s475_s2 }
   0x5   :  { %p362_p2 = pnand %p360_p1, %p357_p0 }
   0x7   :  { %365 = shalt.err (!%p362_p2)
}
   0x8   :  { %s366_s21 = scalar_lea.vmem %s20_s13, 512  ;;  %p371_p4 = scmp.lt.s32.totalorder %s20_s13, %s20_s13 }
   0x9   :  { %p367_p3 = scmp.ne.s32.totalorder %s20_s13, %s366_s21  ;;  %p372_p5 = scmp.lt.s32.totalorder %s366_s21, %s366_s21 }
   0xb   :  { %p373_p6 = por %p372_p5, %p371_p4 }
   0xd   :  { %p374_p7 = pnand %p373_p6, %p367_p3 }
   0xf   :  { %377 = shalt.err (!%p374_p7)
}
  0x10   :  { %s405_s22 = smov 128   ;;  %s406_s23 = smov 8  }
  0x11   :  { %25 = dma.hbm_to_vmem [thread:$0]  %s475_s2, 512, %s20_s13, [#allocation4], %s405_s22, %s405_s22, %s406_s23  }
  0x12   :  { %400 = dma.done.wait [#allocation4], 512  }
  0x13   :  { %401 = vsyncadd [#allocation4], 4294966784  ;;  %v40_v0 = vlaneseq  ;;  %v34_v6 = vld [vmem:[%s473_s0] sm:$0xff]  ;;  %v36_v20 = vld [vmem:[#allocation3 + $0x8] sm:$0xff]  ;;  %v407_v22 = vmov 0.0|0.0   ;;  %vm408_vm0 = vmmov 0  }
  0x14   :  { %v35_v19 = vld [vmem:[#allocation3] sm:$0xff]  ;;  %339 = vmatprep.subr.bf16.mxu0 %v407_v22  ;;  %v37_v23 = vld [vmem:[#allocation3 + $0x10] sm:$0xff]  ;;  %v38_v24 = vld [vmem:[#allocation3 + $0x18] sm:$0xff]  ;;  %v409_v26 = vmov 0.0   ;;  %v410_v28 = vmov 0   ;;  %vm124_vm1 = vcmask 261120  }
  0x15   :  { %v45_v1 = vshrl.u32 %v40_v0, 7  ;;  %v340_v21 = vpack.c.bf16 %v36_v20, %v35_v19  ;;  %v343_v25 = vpack.c.bf16 %v38_v24, %v37_v23  ;;  %336 = vmatprep.mubr.msk.f32.mxu0 %vm408_vm0, %v409_v26  ;;  %v289_v27 = vld [vmem:[%s474_s1] sm:$0xff]  ;;  %353 = vset.pattern.permute.xlu0 %v410_v28  ;;  %v41_v30 = vand.u32 127, %v40_v0  ;;  %s411_s1 = smov [#allocation6]  }
  0x16   :  { %354 = vrcp.f32 %v289_v27  ;;  %vm198_vm8 = vcmask 1041409   ;;  %vm200_vm11 = vcmask 1042434   ;;  %vm202_vm12 = vcmask 1043459   ;;  %s305_s28 = sshll.u32 %s411_s1, 4  ;;  %s306_s28 = int_to_ptr.vmem [resolvable:$true] %s305_s28 }
  0x17   :  { %v60_v2 = vsub.s32 2, %v45_v1  ;;  %v46_v3 = vsub.s32 0, %v45_v1  ;;  %v67_v4 = vsub.s32 3, %v45_v1  ;;  %v53_v5 = vsub.s32 1, %v45_v1  ;;  %341 = vmatpush3.bf16.msra.mxu0 %v340_v21  ;;  %s378_s29 = scalar_lea.vmem %s306_s28, 128  ;;  %p383_p9 = scmp.lt.s32.totalorder %s306_s28, %s306_s28 }
  0x18   :  { %v81_v11 = vsub.s32 5, %v45_v1  ;;  %v74_v12 = vsub.s32 4, %v45_v1  ;;  %v95_v15 = vsub.s32 7, %v45_v1  ;;  %v88_v16 = vsub.s32 6, %v45_v1  ;;  %342 = vmatprep.subr.bf16.mxu0 %v407_v22  ;;  %p379_p8 = scmp.ne.s32.totalorder %s306_s28, %s378_s29  ;;  %p384_p10 = scmp.lt.s32.totalorder %s378_s29, %s378_s29 }
  0x19   :  { %v61_v7 = vrot.slane %v34_v6, %v60_v2  ;;  %v47_v8 = vrot.slane %v34_v6, %v46_v3  ;;  %v68_v9 = vrot.slane %v34_v6, %v67_v4  ;;  %v54_v10 = vrot.slane %v34_v6, %v53_v5 }
  0x1a   :  { %v82_v13 = vrot.slane %v34_v6, %v81_v11  ;;  %v75_v14 = vrot.slane %v34_v6, %v74_v12  ;;  %v96_v17 = vrot.slane %v34_v6, %v95_v15  ;;  %v89_v18 = vrot.slane %v34_v6, %v88_v16  ;;  %p385_p11 = por %p384_p10, %p383_p9 }
  0x1b   :  { %63 = vbcast.lane.b32.xlu1 %v61_v7, 256  ;;  %49 = vbcast.lane.b32.xlu0 %v47_v8, 256  ;;  %vm204_vm13 = vcmask 1044484   ;;  %vm206_vm14 = vcmask 1045509   ;;  %vm208_vm15 = vcmask 1046534   ;;  %vm210_vm0 = vcmask 1047559  }
  0x1c   :  { %344 = vmatpush3.bf16.msra.mxu0 %v343_v25  ;;  %p386_p12 = pnand %p385_p11, %p379_p8 }
  0x1f   :  { %70 = vbcast.lane.b32.xlu1 %v68_v9, 256  ;;  %56 = vbcast.lane.b32.xlu0 %v54_v10, 256 }
  0x20   :  { %v355_v29 = vpop.eup %354 }
  0x23   :  { %84 = vbcast.lane.b32.xlu1 %v82_v13, 256  ;;  %77 = vbcast.lane.b32.xlu0 %v75_v14, 256 }
  0x27   :  { %98 = vbcast.lane.b32.xlu1 %v96_v17, 256  ;;  %91 = vbcast.lane.b32.xlu0 %v89_v18, 256 }
  0x2b   :  { %294 = vperm.xlu0 %353, %v355_v29  }
  0x8d   :  { %v64_v31 = vpop.permute.xlu1 %63  ;;  %v50_v32 = vpop.permute.xlu0 %49 }
  0x8e   :  { %vm102_vm2 = vcmp.eq.s32.totalorder %v64_v31, %v41_v30  ;;  %vm100_vm3 = vcmp.eq.s32.totalorder %v50_v32, %v41_v30 }
  0x8f   :  { %v316_v33 = vsel %vm102_vm2, 1.0, %v409_v26  ;;  %v314_v34 = vsel %vm100_vm3, 1.0, %v409_v26 }
  0x90   :  { %v139_v35 = vsel %vm124_vm1, %v316_v33, 0.0  ;;  %v125_v36 = vsel %vm124_vm1, %v314_v34, 0.0 }
  0x91   :  { %v140_v37 = vrot.slane %v139_v35, 4  ;;  %v126_v38 = vrot.slane %v125_v36, 4  ;;  %v71_v39 = vpop.permute.xlu1 %70  ;;  %v57_v40 = vpop.permute.xlu0 %56 }
  0x92   :  { %vm103_vm4 = vcmp.eq.s32.totalorder %v71_v39, %v41_v30  ;;  %vm101_vm5 = vcmp.eq.s32.totalorder %v57_v40, %v41_v30 }
  0x93   :  { %v141_v41 = vadd.f32 %v140_v37, %v139_v35  ;;  %v127_v42 = vadd.f32 %v126_v38, %v125_v36  ;;  %v317_v43 = vsel %vm103_vm4, 1.0, %v409_v26  ;;  %v315_v44 = vsel %vm101_vm5, 1.0, %v409_v26 }
  0x94   :  { %v146_v45 = vsel %vm124_vm1, %v317_v43, 0.0  ;;  %v132_v46 = vsel %vm124_vm1, %v315_v44, 0.0 }
  0x95   :  { %v142_v47 = vrot.slane %v141_v41, 2  ;;  %v128_v48 = vrot.slane %v127_v42, 2  ;;  %v147_v49 = vrot.slane %v146_v45, 4  ;;  %v133_v50 = vrot.slane %v132_v46, 4  ;;  %v85_v51 = vpop.permute.xlu1 %84  ;;  %v78_v52 = vpop.permute.xlu0 %77 }
  0x96   :  { %vm105_vm6 = vcmp.eq.s32.totalorder %v85_v51, %v41_v30  ;;  %vm104_vm7 = vcmp.eq.s32.totalorder %v78_v52, %v41_v30 }
  0x97   :  { %v143_v53 = vadd.f32 %v142_v47, %v141_v41  ;;  %v129_v54 = vadd.f32 %v128_v48, %v127_v42  ;;  %v148_v55 = vadd.f32 %v147_v49, %v146_v45  ;;  %v134_v56 = vadd.f32 %v133_v50, %v132_v46 }
  0x98   :  { %v319_v57 = vsel %vm105_vm6, 1.0, %v409_v26  ;;  %v318_v58 = vsel %vm104_vm7, 1.0, %v409_v26 }
  0x99   :  { %v149_v59 = vrot.slane %v148_v55, 2  ;;  %v135_v60 = vrot.slane %v134_v56, 2  ;;  %v99_v61 = vpop.permute.xlu1 %98  ;;  %v92_v62 = vpop.permute.xlu0 %91  ;;  %v160_v63 = vsel %vm124_vm1, %v319_v57, 0.0  ;;  %v153_v0 = vsel %vm124_vm1, %v318_v58, 0.0 }
  0x9a   :  { %vm107_vm9 = vcmp.eq.s32.totalorder %v99_v61, %v41_v30  ;;  %vm106_vm10 = vcmp.eq.s32.totalorder %v92_v62, %v41_v30  ;;  %v144_v1 = vrot.slane %v143_v53, 1  ;;  %v130_v2 = vrot.slane %v129_v54, 1 }
  0x9b   :  { %v150_v3 = vadd.f32 %v149_v59, %v148_v55  ;;  %v136_v4 = vadd.f32 %v135_v60, %v134_v56  ;;  %v161_v5 = vrot.slane %v160_v63, 4  ;;  %v154_v6 = vrot.slane %v153_v0, 4 }
  0x9c   :  { %v321_v7 = vsel %vm107_vm9, 1.0, %v409_v26  ;;  %v320_v8 = vsel %vm106_vm10, 1.0, %v409_v26  ;;  %v145_v16 = vadd.f32 %v144_v1, %v143_v53  ;;  %v131_v17 = vadd.f32 %v130_v2, %v129_v54 }
  0x9d   :  { %v137_v9 = vrot.slane %v136_v4, 1  ;;  %v174_v10 = vsel %vm124_vm1, %v321_v7, 0.0  ;;  %v167_v11 = vsel %vm124_vm1, %v320_v8, 0.0  ;;  %v162_v12 = vadd.f32 %v161_v5, %v160_v63 }
  0x9e   :  { %v155_v13 = vadd.f32 %v154_v6, %v153_v0  ;;  %v175_v14 = vrot.slane %v174_v10, 4  ;;  %v168_v15 = vrot.slane %v167_v11, 4  ;;  %v151_v18 = vrot.slane %v150_v3, 1 }
  0x9f   :  { %v138_v19 = vadd.f32 %v137_v9, %v136_v4  ;;  %v163_v20 = vrot.slane %v162_v12, 2 }
  0xa0   :  { %v156_v21 = vrot.slane %v155_v13, 2  ;;  %v176_v22 = vadd.f32 %v175_v14, %v174_v10  ;;  %v169_v23 = vadd.f32 %v168_v15, %v167_v11  ;;  %v152_v29 = vadd.f32 %v151_v18, %v150_v3 }
  0xa1   :  { %v199_v24 = vsel %vm198_vm8, %v138_v19, %v131_v17  ;;  %v164_v26 = vadd.f32 %v163_v20, %v162_v12 }
  0xa2   :  { %v201_v25 = vsel %vm200_vm11, %v145_v16, %v199_v24  ;;  %v157_v27 = vadd.f32 %v156_v21, %v155_v13  ;;  %v177_v28 = vrot.slane %v176_v22, 2  ;;  %v170_v30 = vrot.slane %v169_v23, 2 }
  0xa3   :  { %v165_v31 = vrot.slane %v164_v26, 1  ;;  %v203_v35 = vsel %vm202_vm12, %v152_v29, %v201_v25 }
  0xa4   :  { %v158_v32 = vrot.slane %v157_v27, 1  ;;  %v178_v33 = vadd.f32 %v177_v28, %v176_v22  ;;  %v171_v34 = vadd.f32 %v170_v30, %v169_v23 }
  0xa5   :  { %v166_v36 = vadd.f32 %v165_v31, %v164_v26 }
  0xa6   :  { %v159_v37 = vadd.f32 %v158_v32, %v157_v27  ;;  %v179_v38 = vrot.slane %v178_v33, 1  ;;  %v172_v39 = vrot.slane %v171_v34, 1 }
  0xa8   :  { %v180_v40 = vadd.f32 %v179_v38, %v178_v33  ;;  %v205_v41 = vsel %vm204_vm13, %v159_v37, %v203_v35  ;;  %v173_v42 = vadd.f32 %v172_v39, %v171_v34 }
  0xa9   :  { %v207_v43 = vsel %vm206_vm14, %v166_v36, %v205_v41 }
  0xaa   :  { %v209_v44 = vsel %vm208_vm15, %v173_v42, %v207_v43  ;;  %v295_v46 = vpop.permute.xlu0 %294 }
  0xab   :  { %v211_v45 = vsel %vm210_vm0, %v180_v40, %v209_v44 }
  0xac   :  { %337 = vmatmul.mubr.msk.f32.vlgmr.msra.gmra.mrb[0].mxu0 %vm124_vm1, %v211_v45 }
 0x17f   :  { %v280_v47 = vpop.f32.mrb[0].mxu0 }
 0x180   :  { %v297_v48 = vmul.f32 %v295_v46, %v280_v47  ;;  %v338_v49 = vpop.f32.mrb[1].mxu0 }
 0x182   :  { %298 = vst [vmem:[#allocation6] sm:$0xff] %v297_v48 }
 0x183   :  { %389 = shalt.err (!%p386_p12)
}
 0x184   :  { %s390_s5 = scalar_lea.hbm %s476_s3, 128 }
 0x185   :  { %p391_p13 = scmp.ne.s32.totalorder %s476_s3, %s390_s5  ;;  %p394_p0 = scmp.lt.u32.totalorder %s390_s5, %s476_s3 }
 0x187   :  { %p396_p1 = pnand %p394_p0, %p391_p13 }
 0x189   :  { %399 = shalt.err (!%p396_p1)
}
 0x18a   :  { %308 = dma.vmem_to_hbm [thread:$0]  %s306_s28, 128, %s476_s3, [#allocation5]  }
 0x18b   :  { %402 = dma.done.wait [#allocation5], 128  }
 0x18c   :  { %403 = vsyncadd [#allocation5], 4294967168 }
 0x18d   :  { %312 = vsyncpa [#allocation4], 1 }
 0x18e   :  { %313 = vsyncpa [#allocation5], 1 }

</bundles_post_ra>
